<compile_context>
chip_gen: v6e
topology: v6e:2x2x1
jax: 0.10.0
libtpu: 0.0.40
codegen_flags: <defaults>
</compile_context>

<pallas_src>
import jax
import jax.numpy as jnp
from jax.experimental import pallas as pl
from jax.experimental.pallas import tpu as pltpu

STATE_DIM = 5
STATE_DIM_PAD = 8      # sublane-pad 5 -> 8 (dense DMA / layout; NOT padded to 128)
HIDDEN = 64
LANE = 128
TB_MAX = 16384         # max batch tile along the lane axis (multiple of 128)


def _round_up(x, m):
    return (x + m - 1) // m * m


def _cdiv(a, b):
    return (a + b - 1) // b


def _choose_tiles(B):
    """Pick (tile_size TB, num_tiles n) with minimal padding waste."""
    Bp = _round_up(B, LANE)
    n = _cdiv(Bp, TB_MAX)
    # Guarantee >=2 grid steps when there is enough work, so both v7x
    # TensorCores get a share of the batch.
    if Bp > 2 * LANE:
        n = max(n, 2)
    TB = _round_up(_cdiv(Bp, n), LANE)
    n = _cdiv(Bp, TB)
    return TB, n


def critic_kernel(xT_ref, w1_ref, b1_ref, w2_ref, b2_ref, w3_ref, b3_ref, o_ref):
    # Transposed layout: activations are (features, batch_tile); batch is the
    # lane axis, so every load/store along it is dense.
    xT = xT_ref[...]                                                    # (8, TB) bf16

    # fc1: (64, 8) @ (8, TB) -> (64, TB); bf16 MXU inputs, f32 accumulation.
    h1 = jnp.dot(w1_ref[...], xT, preferred_element_type=jnp.float32) + b1_ref[...]
    h1 = jnp.maximum(h1, 0.0)

    # fc2: (64, 64) @ (64, TB) -> (64, TB) — the dominant MXU matmul.
    h2 = jnp.dot(w2_ref[...], h1.astype(jnp.bfloat16),
                 preferred_element_type=jnp.float32) + b2_ref[...]
    h2 = jnp.maximum(h2, 0.0)

    # out layer (64 -> 1): VPU multiply + feature(sublane)-axis reduce in f32
    # instead of an N=1 MXU matmul.  Result (1, TB) is a lane-dense row.
    o_ref[...] = jnp.sum(h2 * w3_ref[...], axis=0, keepdims=True) + b3_ref[...]


@jax.jit
def critic_forward(x, params):
    """x: (B, STATE_DIM) float32, params in PyTorch nn.Linear layout -> (B, 1)."""
    w1, b1, w2, b2, w3, b3 = params   # (64,5),(64,),(64,64),(64,),(1,64),(1,)
    B = x.shape[0]

    TB, n_tiles = _choose_tiles(B)
    Bp = TB * n_tiles
    grid = (n_tiles,)

    # Layout prep (inside this jit, so XLA fuses transpose+pad+cast into the
    # single HBM pass feeding the kernel).  Features-by-batch, sublane-padded.
    xT = jnp.pad(x.astype(jnp.float32).T,
                 ((0, STATE_DIM_PAD - STATE_DIM), (0, Bp - B))
                 ).astype(jnp.bfloat16)                                 # (8, Bp)
    w1p = jnp.pad(w1, ((0, 0), (0, STATE_DIM_PAD - STATE_DIM))
                  ).astype(jnp.bfloat16)                                # (64, 8)
    w2c = w2.astype(jnp.bfloat16)                                       # (64, 64)
    b1c = b1.reshape(HIDDEN, 1).astype(jnp.float32)
    b2c = b2.reshape(HIDDEN, 1).astype(jnp.float32)
    w3c = w3.reshape(HIDDEN, 1).astype(jnp.float32)                     # column
    b3c = b3.reshape(1, 1).astype(jnp.float32)

    const = lambda i: (0, 0)   # weights/biases: fetched once, stay resident

    out = pl.pallas_call(
        critic_kernel,
        out_shape=jax.ShapeDtypeStruct((1, Bp), jnp.float32),
        grid=grid,
        in_specs=[
            pl.BlockSpec((STATE_DIM_PAD, TB), lambda i: (0, i)),   # xT tile
            pl.BlockSpec((HIDDEN, STATE_DIM_PAD), const),          # w1 (bf16)
            pl.BlockSpec((HIDDEN, 1), const),                      # b1
            pl.BlockSpec((HIDDEN, HIDDEN), const),                 # w2 (bf16)
            pl.BlockSpec((HIDDEN, 1), const),                      # b2
            pl.BlockSpec((HIDDEN, 1), const),                      # w3 (column)
            pl.BlockSpec((1, 1), const),                           # b3
        ],
        out_specs=pl.BlockSpec((1, TB), lambda i: (0, i)),         # lane-dense
        compiler_params=pltpu.CompilerParams(
            dimension_semantics=("parallel",),                     # megacore split
            vmem_limit_bytes=32 << 20,                             # > v5e 16MiB default
        ),
    )(xT, w1p, b1c, w2c, b2c, w3c, b3c)

    return out[0, :B].reshape(B, 1)


def init_params(key):
    """Deterministic init matching nn.Linear shapes (PyTorch (out, in) layout)."""
    k1, k2, k3, k4, k5, k6 = jax.random.split(key, 6)

    def uniform(k, shape, fan_in):
        bound = 1.0 / jnp.sqrt(fan_in)
        return jax.random.uniform(k, shape, jnp.float32, -bound, bound)

    w1 = uniform(k1, (HIDDEN, STATE_DIM), STATE_DIM)
    b1 = uniform(k2, (HIDDEN,), STATE_DIM)
    w2 = uniform(k3, (HIDDEN, HIDDEN), HIDDEN)
    b2 = uniform(k4, (HIDDEN,), HIDDEN)
    w3 = uniform(k5, (1, HIDDEN), HIDDEN)
    b3 = uniform(k6, (1,), HIDDEN)
    return (w1, b1, w2, b2, w3, b3)


def reference_forward(x, params):
    w1, b1, w2, b2, w3, b3 = params
    h1 = jnp.maximum(x @ w1.T + b1, 0.0)
    h2 = jnp.maximum(h1 @ w2.T + b2, 0.0)
    return h2 @ w3.T + b3


if __name__ == "__main__":
    key = jax.random.PRNGKey(0)
    kx, kp = jax.random.split(key)

    params = init_params(kp)

    # bf16 MXU inputs -> tolerance loosened vs f32 reference.
    ATOL = 1e-2
    RTOL = 1e-2

    # Primary small-shape run.
    batch = 8
    x = jax.random.normal(kx, (batch, STATE_DIM), dtype=jnp.float32)
    out = critic_forward(x, params)
    jax.block_until_ready(out)
    ref = reference_forward(x, params)
    assert out.shape == (batch, 1)
    assert jnp.allclose(out, ref, atol=ATOL, rtol=RTOL), "mismatch vs JAX reference"

    # Secondary check: batch not a multiple of the lane width (exercises padding).
    x2 = jax.random.normal(jax.random.PRNGKey(1), (200, STATE_DIM), dtype=jnp.float32)
    out2 = critic_forward(x2, params)
    jax.block_until_ready(out2)
    ref2 = reference_forward(x2, params)
    assert out2.shape == (200, 1)
    assert jnp.allclose(out2, ref2, atol=ATOL, rtol=RTOL), "mismatch (padded batch)"

    # Tertiary check: exercises the multi-tile (2-step grid) path.
    x3 = jax.random.normal(jax.random.PRNGKey(2), (384, STATE_DIM), dtype=jnp.float32)
    out3 = critic_forward(x3, params)
    jax.block_until_ready(out3)
    ref3 = reference_forward(x3, params)
    assert out3.shape == (384, 1)
    assert jnp.allclose(out3, ref3, atol=ATOL, rtol=RTOL), "mismatch (multi-tile)"

    print("KERNEL_OK")
</pallas_src>

<mosaic_0001>
module attributes {stable_mosaic.version = 11 : i64} {
  func.func @critic_kernel(%arg0: i32, %arg1: memref<8x128xbf16, #tpu.memory_space<vmem>>, %arg2: memref<64x8xbf16, #tpu.memory_space<vmem>>, %arg3: memref<64x1xf32, #tpu.memory_space<vmem>>, %arg4: memref<64x64xbf16, #tpu.memory_space<vmem>>, %arg5: memref<64x1xf32, #tpu.memory_space<vmem>>, %arg6: memref<64x1xf32, #tpu.memory_space<vmem>>, %arg7: memref<1x1xf32, #tpu.memory_space<vmem>>, %arg8: memref<1x128xf32, #tpu.memory_space<vmem>>) attributes {dimension_semantics = [#tpu.dimension_semantics<parallel>], iteration_bounds = array<i64: 1>, scalar_prefetch = 0 : i64, scratch_operands = 0 : i64, tpu.core_type = #tpu.core_type<tc>, window_params = [{transform_indices = @transform_0, window_bounds = array<i64: 8, 128>}, {pipeline_mode = #tpu.pipeline_mode<synchronous>, transform_indices = @transform_1, window_bounds = array<i64: 64, 8>}, {pipeline_mode = #tpu.pipeline_mode<synchronous>, transform_indices = @transform_2, window_bounds = array<i64: 64, 1>}, {pipeline_mode = #tpu.pipeline_mode<synchronous>, transform_indices = @transform_3, window_bounds = array<i64: 64, 64>}, {pipeline_mode = #tpu.pipeline_mode<synchronous>, transform_indices = @transform_4, window_bounds = array<i64: 64, 1>}, {pipeline_mode = #tpu.pipeline_mode<synchronous>, transform_indices = @transform_5, window_bounds = array<i64: 64, 1>}, {pipeline_mode = #tpu.pipeline_mode<synchronous>, transform_indices = @transform_6, window_bounds = array<i64: 1, 1>}, {transform_indices = @transform_7, window_bounds = array<i64: 1, 128>}]} {
    %c0 = arith.constant 0 : index
    %c0_0 = arith.constant 0 : index
    %0 = vector.load %arg1[%c0, %c0_0] : memref<8x128xbf16, #tpu.memory_space<vmem>>, vector<8x128xbf16>
    %c0_1 = arith.constant 0 : index
    %c0_2 = arith.constant 0 : index
    %1 = vector.load %arg2[%c0_1, %c0_2] : memref<64x8xbf16, #tpu.memory_space<vmem>>, vector<64x8xbf16>
    %cst = arith.constant dense<0.000000e+00> : vector<64x128xf32>
    %2 = tpu.matmul %1, %0, %cst {dimension_numbers = #tpu.dot_dimension_numbers<[1], [0], [0], [1], [0, 0, 1, 1], [], []>} : vector<64x8xbf16>, vector<8x128xbf16>, vector<64x128xf32> -> vector<64x128xf32>
    %c0_3 = arith.constant 0 : index
    %c0_4 = arith.constant 0 : index
    %3 = vector.load %arg3[%c0_3, %c0_4] : memref<64x1xf32, #tpu.memory_space<vmem>>, vector<64x1xf32>
    %4 = vector.broadcast %3 : vector<64x1xf32> to vector<64x128xf32>
    %5 = arith.addf %2, %4 : vector<64x128xf32>
    %cst_5 = arith.constant 0.000000e+00 : f32
    %6 = vector.broadcast %cst_5 : f32 to vector<64x128xf32>
    %7 = arith.maximumf %5, %6 : vector<64x128xf32>
    %c0_6 = arith.constant 0 : index
    %c0_7 = arith.constant 0 : index
    %8 = vector.load %arg4[%c0_6, %c0_7] : memref<64x64xbf16, #tpu.memory_space<vmem>>, vector<64x64xbf16>
    %9 = arith.truncf %7 : vector<64x128xf32> to vector<64x128xbf16>
    %cst_8 = arith.constant dense<0.000000e+00> : vector<64x128xf32>
    %10 = tpu.matmul %8, %9, %cst_8 {dimension_numbers = #tpu.dot_dimension_numbers<[1], [0], [0], [1], [0, 0, 1, 1], [], []>} : vector<64x64xbf16>, vector<64x128xbf16>, vector<64x128xf32> -> vector<64x128xf32>
    %c0_9 = arith.constant 0 : index
    %c0_10 = arith.constant 0 : index
    %11 = vector.load %arg5[%c0_9, %c0_10] : memref<64x1xf32, #tpu.memory_space<vmem>>, vector<64x1xf32>
    %12 = vector.broadcast %11 : vector<64x1xf32> to vector<64x128xf32>
    %13 = arith.addf %10, %12 : vector<64x128xf32>
    %cst_11 = arith.constant 0.000000e+00 : f32
    %14 = vector.broadcast %cst_11 : f32 to vector<64x128xf32>
    %15 = arith.maximumf %13, %14 : vector<64x128xf32>
    %c0_12 = arith.constant 0 : index
    %c0_13 = arith.constant 0 : index
    %16 = vector.load %arg6[%c0_12, %c0_13] : memref<64x1xf32, #tpu.memory_space<vmem>>, vector<64x1xf32>
    %17 = vector.broadcast %16 : vector<64x1xf32> to vector<64x128xf32>
    %18 = arith.mulf %15, %17 : vector<64x128xf32>
    %cst_14 = arith.constant dense<0.000000e+00> : vector<128xf32>
    %19 = vector.multi_reduction <add>, %18, %cst_14 [0] : vector<64x128xf32> to vector<128xf32>
    %20 = vector.shape_cast %19 : vector<128xf32> to vector<1x128xf32>
    %c0_15 = arith.constant 0 : index
    %c0_16 = arith.constant 0 : index
    %21 = vector.load %arg7[%c0_15, %c0_16] : memref<1x1xf32, #tpu.memory_space<vmem>>, vector<1x1xf32>
    %22 = vector.broadcast %21 : vector<1x1xf32> to vector<1x128xf32>
    %23 = arith.addf %20, %22 : vector<1x128xf32>
    %c0_17 = arith.constant 0 : index
    %c0_18 = arith.constant 0 : index
    %24 = vector.load %arg8[%c0_17, %c0_18] : memref<1x128xf32, #tpu.memory_space<vmem>>, vector<1x128xf32>
    tpu.vector_store %arg8[%c0_17, %c0_18], %23 {strides = array<i32>} : memref<1x128xf32, #tpu.memory_space<vmem>>, vector<1x128xf32>,
    return
  }
  func.func @transform_0(%arg0: i32) -> (i32, i32) {
    %c0_i32 = arith.constant 0 : i32
    %c0_i32_0 = arith.constant 0 : i32
    return %c0_i32, %arg0 : i32, i32
  }
  func.func @transform_1(%arg0: i32) -> (i32, i32) {
    %c0_i32 = arith.constant 0 : i32
    %c0_i32_0 = arith.constant 0 : i32
    %c0_i32_1 = arith.constant 0 : i32
    return %c0_i32, %c0_i32_0 : i32, i32
  }
  func.func @transform_2(%arg0: i32) -> (i32, i32) {
    %c0_i32 = arith.constant 0 : i32
    %c0_i32_0 = arith.constant 0 : i32
    %c0_i32_1 = arith.constant 0 : i32
    return %c0_i32, %c0_i32_0 : i32, i32
  }
  func.func @transform_3(%arg0: i32) -> (i32, i32) {
    %c0_i32 = arith.constant 0 : i32
    %c0_i32_0 = arith.constant 0 : i32
    %c0_i32_1 = arith.constant 0 : i32
    return %c0_i32, %c0_i32_0 : i32, i32
  }
  func.func @transform_4(%arg0: i32) -> (i32, i32) {
    %c0_i32 = arith.constant 0 : i32
    %c0_i32_0 = arith.constant 0 : i32
    %c0_i32_1 = arith.constant 0 : i32
    return %c0_i32, %c0_i32_0 : i32, i32
  }
  func.func @transform_5(%arg0: i32) -> (i32, i32) {
    %c0_i32 = arith.constant 0 : i32
    %c0_i32_0 = arith.constant 0 : i32
    %c0_i32_1 = arith.constant 0 : i32
    return %c0_i32, %c0_i32_0 : i32, i32
  }
  func.func @transform_6(%arg0: i32) -> (i32, i32) {
    %c0_i32 = arith.constant 0 : i32
    %c0_i32_0 = arith.constant 0 : i32
    %c0_i32_1 = arith.constant 0 : i32
    return %c0_i32, %c0_i32_0 : i32, i32
  }
  func.func @transform_7(%arg0: i32) -> (i32, i32) {
    %c0_i32 = arith.constant 0 : i32
    %c0_i32_0 = arith.constant 0 : i32
    return %c0_i32, %arg0 : i32, i32
  }
}

</mosaic_0001>

<bundles_post_ra>
// kernel: critic_forward.1
= control target key start
LH: loop header
LB: loop body
LE: loop exit
PB: predicated region body
PF: predicated region fallthrough
CT: control target
= control target key end

     0   :  { %vm119_vm0 = vcmask 1043456   ;;  %vm106_vm1 = vcmask 64512   ;;  %v522_v1 = vmov 0   ;;  %vm276_vm2 = vcmask 523264   ;;  %s676_s0 = inlined_call_operand.vmem [shape: bf16[8,128], index: 0, kind: input, shape index: {}]   ;;  %s677_s1 = inlined_call_operand.vmem [shape: bf16[64,8], index: 1, kind: input, shape index: {}]   ;;  %s678_s6 = inlined_call_operand.<no memory space> [shape: f32[1,1], index: 6, kind: input, shape index: {}]   ;;  %s679_s2 = inlined_call_operand.vmem [shape: f32[64,1], index: 2, kind: input, shape index: {}]   ;;  %s680_s4 = inlined_call_operand.vmem [shape: f32[64,1], index: 4, kind: input, shape index: {}]   ;;  %s681_s5 = inlined_call_operand.vmem [shape: f32[64,1], index: 5, kind: input, shape index: {}]   ;;  %s682_s3 = inlined_call_operand.vmem [shape: bf16[64,64], index: 3, kind: input, shape index: {}]   ;;  %s683_s7 = inlined_call_operand.vmem [shape: f32[1,128], index: 7, kind: output, shape index: {}]  }
   0x1   :  { %v29_v0 = vld [vmem:[%s676_s0] sm:$0xf]  ;;  %512 = vset.pattern.permute.xlu0 %v522_v1  ;;  %513 = vset.pattern.permute.xlu1 %v522_v1  ;;  %v12_v2 = vstv %s678_s6  ;;  %v515_v5 = vld [vmem:[%s677_s1 + $0x8] sm:$0xff]   ;;  %v516_v6 = vld [vmem:[%s677_s1 + $0x10] sm:$0xff]  }
   0x2   :  { %510 = vmatprep.subr.msk.bf16.mxu0 %vm119_vm0, %v29_v0  ;;  %v121_v3 = vsel %vm119_vm0, %v29_v0, 0  ;;  %v514_v4 = vld [vmem:[%s677_s1] sm:$0xff]   ;;  %13 = vst [vmem:[#allocation2] sm:$0x1] %v12_v2  ;;  %v44_v7 = vld [vmem:[%s679_s2 + $0x30] sm:$0xff]  ;;  %v45_v9 = vld [vmem:[%s679_s2 + $0x38] sm:$0xff] }
   0x3   :  { %477 = vmatpush3.bf16.msra.mxu0 %v121_v3  ;;  %478 = vmatprep.mubr.msk.bf16.mxu0 %vm106_vm1, %v514_v4  ;;  %v42_v8 = vld [vmem:[%s679_s2 + $0x20] sm:$0xff]  ;;  %v43_v10 = vld [vmem:[%s679_s2 + $0x28] sm:$0xff]  ;;  %v517_v11 = vld [vmem:[%s677_s1 + $0x18] sm:$0xff]  }
   0x4   :  { %78 = vperm.xlu0 %512, %v44_v7   ;;  %68 = vperm.xlu1 %513, %v42_v8   ;;  %v40_v12 = vld [vmem:[%s679_s2 + $0x10] sm:$0xff]  ;;  %v41_v13 = vld [vmem:[%s679_s2 + $0x18] sm:$0xff]  ;;  %v38_v14 = vld [vmem:[%s679_s2] sm:$0xff] }
   0x5   :  { %v39_v15 = vld [vmem:[%s679_s2 + $0x8] sm:$0xff]  ;;  %v208_v16 = vld [vmem:[%s680_s4] sm:$0xff]  ;;  %v210_v18 = vld [vmem:[%s680_s4 + $0x10] sm:$0xff] }
   0x6   :  { %479 = vmatmul.mubr.msk.bf16.vlgmr.msra.gmra.mxu0 %vm106_vm1, %v515_v5  ;;  %v209_v17 = vld [vmem:[%s680_s4 + $0x8] sm:$0xff]  ;;  %v211_v19 = vld [vmem:[%s680_s4 + $0x18] sm:$0xff]  ;;  %v362_v20 = vld [vmem:[%s681_s5] sm:$0xff] }
   0x7   :  { %482 = vmatprep.mubr.msk.bf16.mxu0 %vm106_vm1, %v516_v6  ;;  %v363_v21 = vld [vmem:[%s681_s5 + $0x8] sm:$0xff]  ;;  %v212_v22 = vld [vmem:[%s680_s4 + $0x20] sm:$0xff]  ;;  %v364_v23 = vld [vmem:[%s681_s5 + $0x10] sm:$0xff] }
   0x8   :  { %83 = vperm.xlu0 %512, %v45_v9   ;;  %73 = vperm.xlu1 %513, %v43_v10   ;;  %v213_v24 = vld [vmem:[%s680_s4 + $0x28] sm:$0xff]  ;;  %v365_v25 = vld [vmem:[%s681_s5 + $0x18] sm:$0xff]  ;;  %v214_v26 = vld [vmem:[%s680_s4 + $0x30] sm:$0xff] }
   0x9   :  { %v366_v27 = vld [vmem:[%s681_s5 + $0x20] sm:$0xff]  ;;  %v215_v28 = vld [vmem:[%s680_s4 + $0x38] sm:$0xff]  ;;  %v367_v29 = vld [vmem:[%s681_s5 + $0x28] sm:$0xff] }
   0xa   :  { %v368_v30 = vld [vmem:[%s681_s5 + $0x30] sm:$0xff]  ;;  %v369_v31 = vld [vmem:[%s681_s5 + $0x38] sm:$0xff]  ;;  %v431_v32 = vld [vmem:[#allocation2] sm:$0x1] }
   0xb   :  { %v518_v33 = vld [vmem:[%s682_s3] sm:$0xff]   ;;  %v519_v34 = vld [vmem:[%s682_s3 + $0x10] sm:$0xff]   ;;  %v520_v7 = vld [vmem:[%s682_s3 + $0x8] sm:$0xff]  }
   0xc   :  { %58 = vperm.xlu0 %512, %v40_v12   ;;  %63 = vperm.xlu1 %513, %v41_v13   ;;  %v521_v8 = vld [vmem:[%s682_s3 + $0x18] sm:$0xff]  }
   0xd   :  { %498 = vmatprep.mubr.msk.bf16.mxu1 %vm276_vm2, %v519_v34 }
   0xe   :  { %483 = vmatmul.mubr.msk.bf16.gmra.mxu0 %vm106_vm1, %v517_v11 }
   0xf   :  { %494 = vmatprep.mubr.msk.bf16.mxu0 %vm276_vm2, %v518_v33 }
  0x10   :  { %48 = vperm.xlu0 %512, %v38_v14   ;;  %53 = vperm.xlu1 %513, %v39_v15  }
  0x14   :  { %218 = vperm.xlu0 %512, %v208_v16   ;;  %223 = vperm.xlu1 %513, %v209_v17  }
  0x18   :  { %228 = vperm.xlu0 %512, %v210_v18   ;;  %233 = vperm.xlu1 %513, %v211_v19  }
  0x1c   :  { %372 = vperm.xlu0 %512, %v362_v20   ;;  %377 = vperm.xlu1 %513, %v363_v21  }
  0x20   :  { %238 = vperm.xlu0 %512, %v212_v22   ;;  %382 = vperm.xlu1 %513, %v364_v23  }
  0x24   :  { %243 = vperm.xlu0 %512, %v213_v24   ;;  %387 = vperm.xlu1 %513, %v365_v25  }
  0x28   :  { %248 = vperm.xlu0 %512, %v214_v26   ;;  %392 = vperm.xlu1 %513, %v366_v27  }
  0x2c   :  { %253 = vperm.xlu0 %512, %v215_v28   ;;  %397 = vperm.xlu1 %513, %v367_v29  }
  0x30   :  { %402 = vperm.xlu0 %512, %v368_v30   ;;  %407 = vperm.xlu1 %513, %v369_v31  }
  0x34   :  { %434 = vperm.xlu0 %512, %v431_v32  }
  0x7f   :  { %v69_v35 = vpop.permute.xlu1 %68  ;;  %v79_v37 = vpop.permute.xlu0 %78 }
  0x83   :  { %v74_v40 = vpop.permute.xlu1 %73  ;;  %v84_v42 = vpop.permute.xlu0 %83 }
  0x87   :  { %v64_v46 = vpop.permute.xlu1 %63  ;;  %v59_v50 = vpop.permute.xlu0 %58 }
  0x8b   :  { %v54_v60 = vpop.permute.xlu1 %53  ;;  %v49_v0 = vpop.permute.xlu0 %48 }
  0x8f   :  { %v219_v9 = vpop.permute.xlu0 %218  ;;  %v224_v10 = vpop.permute.xlu1 %223 }
  0x93   :  { %v229_v11 = vpop.permute.xlu0 %228  ;;  %v234_v12 = vpop.permute.xlu1 %233 }
  0x97   :  { %v373_v13 = vpop.permute.xlu0 %372  ;;  %v378_v14 = vpop.permute.xlu1 %377 }
  0x9b   :  { %v239_v15 = vpop.permute.xlu0 %238  ;;  %v383_v16 = vpop.permute.xlu1 %382 }
  0x9f   :  { %v244_v19 = vpop.permute.xlu0 %243  ;;  %v388_v22 = vpop.permute.xlu1 %387 }
  0xa3   :  { %v249_v31 = vpop.permute.xlu0 %248 }
  0xc6   :  { %v480_v36 = vpop.f32.mrf.mxu0 }
  0xc7   :  { %v166_v56 = vadd.f32 %v480_v36, %v59_v50  ;;  %v393_v36 = vpop.permute.xlu1 %392 }
  0xc8   :  { %v157_v38 = vpop.f32.mrf.mxu0 }
  0xc9   :  { %v190_v1 = vmax.f32 %v166_v56, 0.0  ;;  %v158_v2 = vadd.f32 %v157_v38, %v49_v0 }
  0xca   :  { %v481_v39 = vpop.f32.mrf.mxu0 }
  0xcb   :  { %v169_v52 = vadd.f32 %v481_v39, %v64_v46  ;;  %v188_v5 = vmax.f32 %v158_v2, 0.0  ;;  %v398_v50 = vpop.permute.xlu1 %397 }
  0xcc   :  { %v160_v41 = vpop.f32.mrf.mxu0 }
  0xcd   :  { %v191_v61 = vmax.f32 %v169_v52, 0.0  ;;  %v161_v62 = vadd.f32 %v160_v41, %v54_v60 }
  0xce   :  { %v484_v43 = vpop.f32.mrf.mxu0 }
  0xcf   :  { %v182_v45 = vadd.f32 %v484_v43, %v79_v37  ;;  %v205_v3 = vpack.c.bf16 %v191_v61, %v190_v1  ;;  %v189_v4 = vmax.f32 %v161_v62, 0.0  ;;  %v408_v60 = vpop.permute.xlu1 %407 }
  0xd0   :  { %v173_v44 = vpop.f32.mrf.mxu0 }
  0xd1   :  { %v174_v48 = vadd.f32 %v173_v44, %v69_v35  ;;  %v194_v53 = vmax.f32 %v182_v45, 0.0  ;;  %v204_v6 = vpack.c.bf16 %v189_v4, %v188_v5  ;;  %v254_v45 = vpop.permute.xlu0 %253 }
  0xd2   :  { %v485_v47 = vpop.f32.mrf.mxu0 }
  0xd3   :  { %v185_v49 = vadd.f32 %v485_v47, %v84_v42  ;;  %v192_v57 = vmax.f32 %v174_v48, 0.0 }
  0xd4   :  { %v176_v51 = vpop.f32.mrf.mxu0 }
  0xd5   :  { %v195_v54 = vmax.f32 %v185_v49, 0.0  ;;  %v177_v55 = vadd.f32 %v176_v51, %v74_v40 }
  0xd7   :  { %v207_v58 = vpack.c.bf16 %v195_v54, %v194_v53  ;;  %v193_v59 = vmax.f32 %v177_v55, 0.0 }
  0xd9   :  { %v206_v63 = vpack.c.bf16 %v193_v59, %v192_v57  ;;  %486 = vmatprep.subr.bf16.mxu0 %v207_v58  ;;  %502 = vmatprep.subr.bf16.mxu1 %v207_v58  ;;  %v403_v57 = vpop.permute.xlu0 %402 }
  0xda   :  { %487 = vmatpush3.bf16.msra.mxu0 %v207_v58  ;;  %506 = vmatpush3.bf16.msra.mxu1 %v207_v58 }
  0xdb   :  { %488 = vmatprep.subr.bf16.mxu0 %v206_v63  ;;  %503 = vmatprep.subr.bf16.mxu1 %v206_v63 }
  0xde   :  { %489 = vmatpush3.bf16.msra.mxu0 %v206_v63  ;;  %507 = vmatpush3.bf16.msra.mxu1 %v206_v63  ;;  %v437_v63 = vlaneseq }
  0xdf   :  { %490 = vmatprep.subr.bf16.mxu0 %v205_v3  ;;  %504 = vmatprep.subr.bf16.mxu1 %v205_v3 }
  0xe0   :  { %v438_v2 = vshrl.u32 %v437_v63, 7 }
  0xe2   :  { %491 = vmatpush3.bf16.msra.mxu0 %v205_v3  ;;  %508 = vmatpush3.bf16.msra.mxu1 %v205_v3  ;;  %v439_v5 = vsub.s32 0, %v438_v2 }
  0xe3   :  { %492 = vmatprep.subr.bf16.mxu0 %v204_v6  ;;  %505 = vmatprep.subr.bf16.mxu1 %v204_v6 }
  0xe6   :  { %493 = vmatpush3.bf16.msra.mxu0 %v204_v6  ;;  %509 = vmatpush3.bf16.msra.mxu1 %v204_v6 }
  0xe9   :  { %495 = vmatmul.mubr.msk.bf16.vlgmr.msra.gmra.mxu0 %vm276_vm2, %v520_v7  ;;  %499 = vmatmul.mubr.msk.bf16.vlgmr.msra.gmra.mxu1 %vm276_vm2, %v521_v8  ;;  %v435_v7 = vpop.permute.xlu0 %434 }
 0x1a9   :  { %v496_v17 = vpop.f32.mrf.mxu0  ;;  %v500_v18 = vpop.f32.mrf.mxu1 }
 0x1aa   :  { %v332_v26 = vadd.f32 %v496_v17, %v229_v11  ;;  %v348_v42 = vadd.f32 %v500_v18, %v249_v31 }
 0x1ab   :  { %v323_v20 = vpop.f32.mrf.mxu0  ;;  %v339_v21 = vpop.f32.mrf.mxu1 }
 0x1ac   :  { %v324_v23 = vadd.f32 %v323_v20, %v219_v9  ;;  %v356_v33 = vmax.f32 %v332_v26, 0.0  ;;  %v340_v34 = vadd.f32 %v339_v21, %v239_v15  ;;  %v360_v51 = vmax.f32 %v348_v42, 0.0 }
 0x1ad   :  { %v497_v24 = vpop.f32.mrf.mxu0  ;;  %v501_v25 = vpop.f32.mrf.mxu1  ;;  %v440_v9 = vrot.slane %v435_v7, %v439_v5 }
 0x1ae   :  { %v354_v28 = vmax.f32 %v324_v23, 0.0  ;;  %v335_v29 = vadd.f32 %v497_v24, %v234_v12  ;;  %v412_v41 = vmul.f32 %v383_v16, %v356_v33  ;;  %v358_v43 = vmax.f32 %v340_v34, 0.0 }
 0x1af   :  { %v326_v27 = vpop.f32.mrf.mxu0  ;;  %v342_v32 = vpop.f32.mrf.mxu1  ;;  %v351_v47 = vadd.f32 %v501_v25, %v254_v45  ;;  %v416_v58 = vmul.f32 %v403_v57, %v360_v51 }
 0x1b0   :  { %v327_v30 = vadd.f32 %v326_v27, %v224_v10  ;;  %v410_v37 = vmul.f32 %v373_v13, %v354_v28  ;;  %v357_v38 = vmax.f32 %v335_v29, 0.0  ;;  %v343_v40 = vadd.f32 %v342_v32, %v244_v19 }
 0x1b1   :  { %v414_v52 = vmul.f32 %v393_v36, %v358_v43  ;;  %v361_v54 = vmax.f32 %v351_v47, 0.0 }
 0x1b2   :  { %v355_v35 = vmax.f32 %v327_v30, 0.0  ;;  %v413_v46 = vmul.f32 %v388_v22, %v357_v38  ;;  %v359_v49 = vmax.f32 %v343_v40, 0.0 }
 0x1b3   :  { %v417_v61 = vmul.f32 %v408_v60, %v361_v54 }
 0x1b4   :  { %v411_v39 = vmul.f32 %v378_v14, %v355_v35  ;;  %v415_v55 = vmul.f32 %v398_v50, %v359_v49 }
 0x1b6   :  { %v418_v44 = vadd.f32 %v411_v39, %v410_v37 }
 0x1b8   :  { %v419_v48 = vadd.f32 %v418_v44, %v412_v41 }
 0x1ba   :  { %v420_v53 = vadd.f32 %v419_v48, %v413_v46 }
 0x1bc   :  { %v421_v56 = vadd.f32 %v420_v53, %v414_v52 }
 0x1be   :  { %v422_v59 = vadd.f32 %v421_v56, %v415_v55 }
 0x1c0   :  { %v423_v62 = vadd.f32 %v422_v59, %v416_v58 }
 0x1c2   :  { %v424_v0 = vadd.f32 %v423_v62, %v417_v61 }
 0x1c4   :  { %v425_v1 = vrot.slane %v424_v0, 4 }
 0x1c6   :  { %v426_v3 = vadd.f32 %v425_v1, %v424_v0 }
 0x1c8   :  { %v427_v4 = vrot.slane %v426_v3, 2 }
 0x1ca   :  { %v428_v6 = vadd.f32 %v427_v4, %v426_v3 }
 0x1cc   :  { %v429_v8 = vrot.slane %v428_v6, 1 }
 0x1ce   :  { %v430_v10 = vadd.f32 %v429_v8, %v428_v6 }
 0x1d0   :  { %v441_v11 = vadd.f32 %v440_v9, %v430_v10 }
 0x1d2   :  { %442 = vst [vmem:[%s683_s7] sm:$0x1] %v441_v11 }

</bundles_post_ra>
